<compile_context>
chip_gen: v7x
topology: tpu7x:2x2x1
jax: 0.10.0
libtpu: 0.0.40
codegen_flags: <defaults>
</compile_context>

<pallas_src>
import functools

import jax
import jax.numpy as jnp
import numpy as np
from jax.experimental import pallas as pl
from jax.experimental.pallas import tpu as pltpu


def _round_up(a: int, b: int) -> int:
    return ((a + b - 1) // b) * b


def _feature_layer_kernel(x_ref, w_ref, b_ref, o_ref, acc_ref, *,
                          num_f_blocks, f_total, tf, mask_f_tail):
    # x_ref: (TB, TG, TF) natural layout   w_ref: (TG, TF)
    # b_ref: (1, TG)                       o_ref: (TB, TG)   acc_ref: (TB, TG) f32
    f_idx = pl.program_id(2)  # innermost (reduction) grid axis

    @pl.when(f_idx == 0)
    def _init():
        acc_ref[...] = jnp.zeros_like(acc_ref)

    x = x_ref[...].astype(jnp.float32)          # (TB, TG, TF)
    w = w_ref[...].astype(jnp.float32)          # (TG, TF)
    prod = x * w[None, :, :]                    # broadcast over batch rows

    if mask_f_tail:
        # F is tiled and F % TF != 0: the last F chunk is ragged, so zero the
        # out-of-range feature lanes before they enter the reduction.
        # (Static flag -> this code is only emitted when actually needed.)
        f_pos = jax.lax.broadcasted_iota(jnp.int32, prod.shape, dimension=2)
        valid = f_total - f_idx * tf
        prod = jnp.where(f_pos < valid, prod, 0.0)

    # Reduce the feature (lane) axis; genes land on the lane axis of the
    # (TB, TG) result, so accumulator updates and output stores are lane-dense.
    acc_ref[...] += jnp.sum(prod, axis=-1)

    @pl.when(f_idx == num_f_blocks - 1)
    def _finalize():
        o_ref[...] = (acc_ref[...] + b_ref[...].astype(jnp.float32)).astype(o_ref.dtype)


def feature_layer(x, weights, bias, *, target_block_bytes=8 * 1024 * 1024):
    """out = sum(x * weights, axis=-1) + bias.

    x: (..., num_genes, num_features), weights: (num_genes, num_features),
    bias: (num_genes,)  ->  out: (..., num_genes)
    """
    *lead, G, F = x.shape
    assert weights.shape == (G, F), (weights.shape, (G, F))
    assert bias.shape == (G,), (bias.shape, (G,))
    B = int(np.prod(lead)) if lead else 1

    xb = x.reshape(B, G, F)      # merge leading dims: layout-preserving, no HBM copy
    b2 = bias.reshape(1, G)      # metadata-only reshape

    itemsize = np.dtype(x.dtype).itemsize

    # ----------------------------- tile planning -----------------------------
    # Gene tile: full G when it fits comfortably (weights/bias fully resident);
    # otherwise a lane-aligned 1024-gene tile (ragged G tail handled by Pallas).
    TG = G if G <= 2048 else 1024

    tb_min = B if B < 8 else 8

    def x_block_bytes(tb, tf):
        # VMEM footprint of one x block in the (8, 128)-tiled layout (lane pad).
        return tb * _round_up(TG, 8) * _round_up(tf, 128) * itemsize

    # Feature tile: keep full F unless even a minimum-height block busts the
    # budget; then tile F in 128-lane chunks (adds the reduction grid axis).
    TF = F
    if x_block_bytes(tb_min, F) > target_block_bytes and F > 128:
        tf = target_block_bytes // (tb_min * _round_up(TG, 8) * itemsize)
        TF = max(128, (tf // 128) * 128)
        if TF >= F:
            TF = F

    # Batch tile: as many rows as fit in the per-block budget (multiple of 8).
    row_bytes = _round_up(TG, 8) * _round_up(TF, 128) * itemsize
    if B < 8:
        TB = B
    else:
        TB = max(8, (target_block_bytes // row_bytes) // 8 * 8)
        TB = min(TB, _round_up(B, 8))

    def est_vmem(tb, tf):
        x_blk = x_block_bytes(tb, tf)
        w_blk = _round_up(TG, 8) * _round_up(tf, 128) * itemsize
        bias_blk = 8 * _round_up(TG, 128) * itemsize
        o_blk = _round_up(tb, 8) * _round_up(TG, 128) * itemsize
        acc_blk = _round_up(tb, 8) * _round_up(TG, 128) * 4
        prod_blk = tb * _round_up(TG, 8) * _round_up(tf, 128) * 4  # f32 intermediate
        # All pallas_call operands are double-buffered; acc + intermediate extra.
        return 2 * (x_blk + w_blk + bias_blk + o_blk) + acc_blk + prod_blk

    # Never ask for more scoped VMEM than ~50 MiB (v7x: 64 MiB physical per TC).
    while est_vmem(TB, TF) > (50 << 20):
        if B >= 8 and TB > 8:
            TB = max(8, TB - 8)
        elif TF != F and TF > 128:
            TF -= 128
        else:
            break

    n_b = pl.cdiv(B, TB)
    n_g = pl.cdiv(G, TG)
    n_f = pl.cdiv(F, TF)
    mask_f_tail = (n_f > 1) and (F % TF != 0)

    # ------------------------------ grid & specs ------------------------------
    # Gene tiles outer, batch tiles inner -> weights/bias stay VMEM-resident
    # across the inner batch sweep.  With a single gene tile, put batch first so
    # the core-sharded parallel axis has >= 2 tiles on v7x.
    if n_g >= 2:
        grid = (n_g, n_b, n_f)
        x_map = lambda g, b, f: (b, g, f)
        w_map = lambda g, b, f: (g, f)
        bias_map = lambda g, b, f: (0, g)
        o_map = lambda g, b, f: (b, g)
    else:
        grid = (n_b, n_g, n_f)
        x_map = lambda b, g, f: (b, g, f)
        w_map = lambda b, g, f: (g, f)
        bias_map = lambda b, g, f: (0, g)
        o_map = lambda b, g, f: (b, g)

    vmem_limit = int(min(max(est_vmem(TB, TF) + (8 << 20), 32 << 20), 56 << 20))

    kernel = functools.partial(
        _feature_layer_kernel,
        num_f_blocks=int(n_f), f_total=F, tf=TF, mask_f_tail=mask_f_tail)

    out = pl.pallas_call(
        kernel,
        out_shape=jax.ShapeDtypeStruct((B, G), x.dtype),
        grid_spec=pltpu.PrefetchScalarGridSpec(
            num_scalar_prefetch=0,
            grid=grid,
            in_specs=[
                pl.BlockSpec((TB, TG, TF), x_map),   # x, natural (B, G, F) layout
                pl.BlockSpec((TG, TF), w_map),       # weights, natural (G, F)
                pl.BlockSpec((1, TG), bias_map),     # bias
            ],
            out_specs=pl.BlockSpec((TB, TG), o_map),
            scratch_shapes=[pltpu.VMEM((TB, TG), jnp.float32)],  # f32 accumulator
        ),
        compiler_params=pltpu.CompilerParams(
            dimension_semantics=("parallel", "parallel", "arbitrary"),
            vmem_limit_bytes=vmem_limit,
        ),
    )(xb, weights, b2)

    return out.reshape(*lead, G) if lead else out.reshape(G)


def init_params(key, num_genes, num_features, dtype=jnp.float32):
    # torch.nn.init.xavier_uniform_ on (num_genes, num_features):
    #   fan_out = num_genes, fan_in = num_features
    bound = float(np.sqrt(6.0 / (num_genes + num_features)))
    weights = jax.random.uniform(
        key, (num_genes, num_features), dtype=dtype, minval=-bound, maxval=bound)
    bias = jnp.zeros((num_genes,), dtype=dtype)
    return weights, bias


if __name__ == "__main__":
    key = jax.random.PRNGKey(0)
    kx, kw = jax.random.split(key)

    # Small, deliberately non-aligned shapes to exercise the ragged-block path.
    batch, num_genes, num_features = 4, 100, 24
    x = jax.random.normal(kx, (batch, num_genes, num_features), dtype=jnp.float32)
    weights, bias = init_params(kw, num_genes, num_features)
    bias = bias + 0.5  # nonzero bias so the bias-add path is actually checked

    out = jax.block_until_ready(feature_layer(x, weights, bias))

    # Reference in plain JAX (same semantics as the PyTorch forward).
    ref = jnp.sum(x * weights[None, :, :], axis=-1) + bias[None, :]
    assert out.shape == (batch, num_genes)
    np.testing.assert_allclose(np.asarray(out), np.asarray(ref), rtol=1e-5, atol=1e-5)

    print("KERNEL_OK")
</pallas_src>

<mosaic_0001>
module attributes {stable_mosaic.version = 11 : i64} {
  func.func @_feature_layer_kernel(%arg0: i32, %arg1: i32, %arg2: i32, %arg3: memref<4x100x24xf32, #tpu.memory_space<vmem>>, %arg4: memref<100x24xf32, #tpu.memory_space<vmem>>, %arg5: memref<1x100xf32, #tpu.memory_space<vmem>>, %arg6: memref<4x100xf32, #tpu.memory_space<vmem>>, %arg7: memref<4x100xf32, #tpu.memory_space<vmem>>) attributes {dimension_semantics = [#tpu.dimension_semantics<parallel>, #tpu.dimension_semantics<parallel>, #tpu.dimension_semantics<arbitrary>], iteration_bounds = array<i64: 1, 1, 1>, scalar_prefetch = 0 : i64, scratch_operands = 1 : i64, tpu.core_type = #tpu.core_type<tc>, window_params = [{transform_indices = @transform_0, window_bounds = array<i64: 4, 100, 24>}, {transform_indices = @transform_1, window_bounds = array<i64: 100, 24>}, {transform_indices = @transform_2, window_bounds = array<i64: 1, 100>}, {transform_indices = @transform_3, window_bounds = array<i64: 4, 100>}]} {
    %c0_i32 = arith.constant 0 : i32
    %0 = arith.cmpi eq, %arg2, %c0_i32 : i32
    %1 = arith.extui %0 : i1 to i32
    %c0_i32_0 = arith.constant 0 : i32
    %2 = arith.cmpi ne, %1, %c0_i32_0 : i32
    scf.if %2 {
      %cst_11 = arith.constant 0.000000e+00 : f32
      %15 = vector.broadcast %cst_11 : f32 to vector<4x100xf32>
      %c0_12 = arith.constant 0 : index
      %c0_13 = arith.constant 0 : index
      %16 = vector.load %arg7[%c0_12, %c0_13] : memref<4x100xf32, #tpu.memory_space<vmem>>, vector<4x100xf32>
      tpu.vector_store %arg7[%c0_12, %c0_13], %15 {strides = array<i32>} : memref<4x100xf32, #tpu.memory_space<vmem>>, vector<4x100xf32>,
    } else {
    }
    %c0 = arith.constant 0 : index
    %c0_1 = arith.constant 0 : index
    %c0_2 = arith.constant 0 : index
    %3 = vector.load %arg3[%c0, %c0_1, %c0_2] : memref<4x100x24xf32, #tpu.memory_space<vmem>>, vector<4x100x24xf32>
    %c0_3 = arith.constant 0 : index
    %c0_4 = arith.constant 0 : index
    %4 = vector.load %arg4[%c0_3, %c0_4] : memref<100x24xf32, #tpu.memory_space<vmem>>, vector<100x24xf32>
    %5 = vector.shape_cast %4 : vector<100x24xf32> to vector<1x100x24xf32>
    %6 = vector.broadcast %5 : vector<1x100x24xf32> to vector<4x100x24xf32>
    %7 = arith.mulf %3, %6 : vector<4x100x24xf32>
    %c0_5 = arith.constant 0 : index
    %c0_6 = arith.constant 0 : index
    %8 = vector.load %arg7[%c0_5, %c0_6] : memref<4x100xf32, #tpu.memory_space<vmem>>, vector<4x100xf32>
    %cst = arith.constant dense<0.000000e+00> : vector<4x100xf32>
    %9 = vector.multi_reduction <add>, %7, %cst [2] : vector<4x100x24xf32> to vector<4x100xf32>
    %10 = arith.addf %8, %9 : vector<4x100xf32>
    %c0_7 = arith.constant 0 : index
    %c0_8 = arith.constant 0 : index
    %11 = vector.load %arg7[%c0_7, %c0_8] : memref<4x100xf32, #tpu.memory_space<vmem>>, vector<4x100xf32>
    tpu.vector_store %arg7[%c0_7, %c0_8], %10 {strides = array<i32>} : memref<4x100xf32, #tpu.memory_space<vmem>>, vector<4x100xf32>,
    %c0_i32_9 = arith.constant 0 : i32
    %12 = arith.cmpi eq, %arg2, %c0_i32_9 : i32
    %13 = arith.extui %12 : i1 to i32
    %c0_i32_10 = arith.constant 0 : i32
    %14 = arith.cmpi ne, %13, %c0_i32_10 : i32
    scf.if %14 {
      %c0_11 = arith.constant 0 : index
      %c0_12 = arith.constant 0 : index
      %15 = vector.load %arg7[%c0_11, %c0_12] : memref<4x100xf32, #tpu.memory_space<vmem>>, vector<4x100xf32>
      %c0_13 = arith.constant 0 : index
      %c0_14 = arith.constant 0 : index
      %16 = vector.load %arg5[%c0_13, %c0_14] : memref<1x100xf32, #tpu.memory_space<vmem>>, vector<1x100xf32>
      %17 = vector.broadcast %16 : vector<1x100xf32> to vector<4x100xf32>
      %18 = arith.addf %15, %17 : vector<4x100xf32>
      %c0_15 = arith.constant 0 : index
      %c0_16 = arith.constant 0 : index
      %19 = vector.load %arg6[%c0_15, %c0_16] : memref<4x100xf32, #tpu.memory_space<vmem>>, vector<4x100xf32>
      tpu.vector_store %arg6[%c0_15, %c0_16], %18 {strides = array<i32>} : memref<4x100xf32, #tpu.memory_space<vmem>>, vector<4x100xf32>,
    } else {
    }
    return
  }
  func.func @transform_0(%arg0: i32, %arg1: i32, %arg2: i32) -> (i32, i32, i32) {
    %c0_i32 = arith.constant 0 : i32
    return %arg0, %arg1, %arg2 : i32, i32, i32
  }
  func.func @transform_1(%arg0: i32, %arg1: i32, %arg2: i32) -> (i32, i32) {
    %c0_i32 = arith.constant 0 : i32
    return %arg1, %arg2 : i32, i32
  }
  func.func @transform_2(%arg0: i32, %arg1: i32, %arg2: i32) -> (i32, i32) {
    %c0_i32 = arith.constant 0 : i32
    %c0_i32_0 = arith.constant 0 : i32
    return %c0_i32, %arg1 : i32, i32
  }
  func.func @transform_3(%arg0: i32, %arg1: i32, %arg2: i32) -> (i32, i32) {
    %c0_i32 = arith.constant 0 : i32
    return %arg0, %arg1 : i32, i32
  }
}

</mosaic_0001>

<bundles_post_ra>
// kernel: tpu_custom_call.1
= control target key start
LH: loop header
LB: loop body
LE: loop exit
PB: predicated region body
PF: predicated region fallthrough
CT: control target
= control target key end

     0   :  { %vm139_vm0 = vcmask 195584   ;;  %s1224_s0 = inlined_call_operand.vmem [shape: f32[4,100,24], index: 0, kind: input, shape index: {}]   ;;  %s1225_s1 = inlined_call_operand.vmem [shape: f32[100,24], index: 1, kind: input, shape index: {}]   ;;  %s1226_s2 = inlined_call_operand.vmem [shape: f32[1,100], index: 2, kind: input, shape index: {}]   ;;  %s1227_s3 = inlined_call_operand.hbm [shape: f32[4,100], index: 3, kind: output, shape index: {}]  }
   0x1   :  { %v34_v0 = vld [vmem:[%s1224_s0 + $0x68] sm:$0xff]  ;;  %v73_v1 = vld [vmem:[%s1225_s1] sm:$0xff]  ;;  %v35_v5 = vld [vmem:[%s1224_s0 + $0x70] sm:$0xff] }
   0x2   :  { %v21_v2 = vld [vmem:[%s1224_s0] sm:$0xff]  ;;  %v99_v3 = vmul.f32 %v73_v1, %v34_v0  ;;  %v74_v6 = vld [vmem:[%s1225_s1 + $0x8] sm:$0xff]  ;;  %v36_v10 = vld [vmem:[%s1224_s0 + $0x78] sm:$0xff] }
   0x3   :  { %v86_v4 = vmul.f32 %v73_v1, %v21_v2  ;;  %v22_v7 = vld [vmem:[%s1224_s0 + $0x8] sm:$0xff]  ;;  %v100_v8 = vmul.f32 %v74_v6, %v35_v5  ;;  %v75_v11 = vld [vmem:[%s1225_s1 + $0x10] sm:$0xff]  ;;  %v48_v19 = vld [vmem:[%s1224_s0 + $0xd8] sm:$0xff] }
   0x4   :  { %v87_v9 = vmul.f32 %v74_v6, %v22_v7  ;;  %v23_v12 = vld [vmem:[%s1224_s0 + $0x10] sm:$0xff]  ;;  %v180_v13 = vsel %vm139_vm0, %v99_v3, 0.0  ;;  %v101_v17 = vmul.f32 %v75_v11, %v36_v10  ;;  %v113_v23 = vmul.f32 %v74_v6, %v48_v19  ;;  %v37_v25 = vld [vmem:[%s1224_s0 + $0x80] sm:$0xff]  ;;  %v76_v26 = vld [vmem:[%s1225_s1 + $0x18] sm:$0xff] }
   0x5   :  { %v140_v14 = vsel %vm139_vm0, %v86_v4, 0.0  ;;  %181 = vadd.xlane.f32.xlu1 %v180_v13  ;;  %v183_v15 = vsel %vm139_vm0, %v100_v8, 0.0  ;;  %v88_v18 = vmul.f32 %v75_v11, %v23_v12  ;;  %v47_v20 = vld [vmem:[%s1224_s0 + $0xd0] sm:$0xff]  ;;  %v24_v27 = vld [vmem:[%s1224_s0 + $0x18] sm:$0xff]  ;;  %v102_v30 = vmul.f32 %v76_v26, %v37_v25  ;;  %v49_v33 = vld [vmem:[%s1224_s0 + $0xe0] sm:$0xff] }
   0x6   :  { %141 = vadd.xlane.f32.xlu0 %v140_v14  ;;  %v143_v16 = vsel %vm139_vm0, %v87_v9, 0.0  ;;  %v186_v21 = vsel %vm139_vm0, %v101_v17, 0.0  ;;  %v112_v24 = vmul.f32 %v73_v1, %v47_v20  ;;  %v222_v28 = vsel %vm139_vm0, %v113_v23, 0.0  ;;  %v60_v32 = vld [vmem:[%s1224_s0 + $0x138] sm:$0xff]  ;;  %v25_v38 = vld [vmem:[%s1224_s0 + $0x20] sm:$0xff]  ;;  %v50_v45 = vld [vmem:[%s1224_s0 + $0xe8] sm:$0xff] }
   0x7   :  { %v146_v22 = vsel %vm139_vm0, %v88_v18, 0.0  ;;  %v89_v31 = vmul.f32 %v76_v26, %v24_v27  ;;  %v189_v34 = vsel %vm139_vm0, %v102_v30, 0.0  ;;  %v125_v36 = vmul.f32 %v73_v1, %v60_v32  ;;  %v77_v39 = vld [vmem:[%s1225_s1 + $0x20] sm:$0xff]  ;;  %v38_v46 = vld [vmem:[%s1224_s0 + $0x88] sm:$0xff] }
   0x8   :  { %v219_v29 = vsel %vm139_vm0, %v112_v24, 0.0  ;;  %v114_v37 = vmul.f32 %v75_v11, %v49_v33  ;;  %v61_v40 = vld [vmem:[%s1224_s0 + $0x140] sm:$0xff]  ;;  %v90_v43 = vmul.f32 %v77_v39, %v25_v38 }
   0x9   :  { %184 = vadd.xlane.f32.xlu1 %v183_v15  ;;  %v149_v35 = vsel %vm139_vm0, %v89_v31, 0.0  ;;  %v258_v41 = vsel %vm139_vm0, %v125_v36, 0.0  ;;  %v126_v44 = vmul.f32 %v74_v6, %v61_v40 }
   0xa   :  { %144 = vadd.xlane.f32.xlu0 %v143_v16  ;;  %v225_v42 = vsel %vm139_vm0, %v114_v37, 0.0 }
   0xd   :  { %187 = vadd.xlane.f32.xlu1 %v186_v21 }
   0xe   :  { %147 = vadd.xlane.f32.xlu0 %v146_v22 }
  0x11   :  { %223 = vadd.xlane.f32.xlu1 %v222_v28 }
  0x12   :  { %220 = vadd.xlane.f32.xlu0 %v219_v29 }
  0x15   :  { %190 = vadd.xlane.f32.xlu1 %v189_v34 }
  0x16   :  { %150 = vadd.xlane.f32.xlu0 %v149_v35 }
  0x17   :  { %8 = vsyncpa [#allocation4], 0  ;;  %v152_v47 = vsel %vm139_vm0, %v90_v43, 0.0  ;;  %v261_v48 = vsel %vm139_vm0, %v126_v44, 0.0  ;;  %v115_v49 = vmul.f32 %v76_v26, %v50_v45  ;;  %v103_v50 = vmul.f32 %v77_v39, %v38_v46  ;;  %v26_v51 = vld [vmem:[%s1224_s0 + $0x28] sm:$0xff]  ;;  %v51_v58 = vld [vmem:[%s1224_s0 + $0xf0] sm:$0xff] }
  0x18   :  { %v78_v52 = vld [vmem:[%s1225_s1 + $0x28] sm:$0xff]  ;;  %v39_v59 = vld [vmem:[%s1224_s0 + $0x90] sm:$0xff]  ;;  %v116_v62 = vmul.f32 %v77_v39, %v51_v58  ;;  %v52_v7 = vld [vmem:[%s1224_s0 + $0xf8] sm:$0xff]  ;;  %vm176_vm1 = vcmask 191488   ;;  %vm19_vm2 = vcmask 814080   ;;  %vm360_vm3 = vcmask 130112  }
  0x19   :  { %259 = vadd.xlane.f32.xlu1 %v258_v41  ;;  %v62_v53 = vld [vmem:[%s1224_s0 + $0x148] sm:$0xff]  ;;  %v228_v54 = vsel %vm139_vm0, %v115_v49, 0.0  ;;  %v192_v55 = vsel %vm139_vm0, %v103_v50, 0.0  ;;  %v91_v56 = vmul.f32 %v78_v52, %v26_v51  ;;  %v104_v63 = vmul.f32 %v78_v52, %v39_v59  ;;  %v27_v0 = vld [vmem:[%s1224_s0 + $0x30] sm:$0xff]  ;;  %v40_v8 = vld [vmem:[%s1224_s0 + $0x98] sm:$0xff]  ;;  %s696_s7 = smov [#allocation3]  }
  0x1a   :  { %226 = vadd.xlane.f32.xlu0 %v225_v42  ;;  %v127_v57 = vmul.f32 %v75_v11, %v62_v53  ;;  %v79_v1 = vld [vmem:[%s1225_s1 + $0x30] sm:$0xff]  ;;  %v231_v3 = vsel %vm139_vm0, %v116_v62, 0.0  ;;  %v117_v11 = vmul.f32 %v78_v52, %v52_v7  ;;  %v28_v13 = vld [vmem:[%s1224_s0 + $0x38] sm:$0xff]  ;;  %v53_v20 = vld [vmem:[%s1224_s0 + $0x100] sm:$0xff]  ;;  %vm367_vm4 = vcmask 195712   ;;  %s660_s8 = sshll.u32 %s696_s7, 4  ;;  %s661_s8 = int_to_ptr.vmem [resolvable:$true] %s660_s8 }
  0x1b   :  { %v155_v60 = vsel %vm139_vm0, %v91_v56, 0.0  ;;  %v63_v2 = vld [vmem:[%s1224_s0 + $0x150] sm:$0xff]  ;;  %v195_v4 = vsel %vm139_vm0, %v104_v63, 0.0  ;;  %v92_v5 = vmul.f32 %v79_v1, %v27_v0  ;;  %v105_v12 = vmul.f32 %v79_v1, %v40_v8  ;;  %v80_v14 = vld [vmem:[%s1225_s1 + $0x38] sm:$0xff]  ;;  %v41_v21 = vld [vmem:[%s1224_s0 + $0xa0] sm:$0xff]  ;;  %s671_s9 = scalar_lea.vmem %s661_s8, 64  ;;  %p676_p1 = scmp.lt.s32.totalorder %s661_s8, %s661_s8 }
  0x1c   :  { %v264_v61 = vsel %vm139_vm0, %v127_v57, 0.0  ;;  %v128_v6 = vmul.f32 %v76_v26, %v63_v2  ;;  %v64_v15 = vld [vmem:[%s1224_s0 + $0x158] sm:$0xff]  ;;  %v234_v16 = vsel %vm139_vm0, %v117_v11, 0.0  ;;  %v93_v18 = vmul.f32 %v80_v14, %v28_v13  ;;  %v29_v26 = vld [vmem:[%s1224_s0 + $0x40] sm:$0xff]  ;;  %v54_v33 = vld [vmem:[%s1224_s0 + $0x108] sm:$0xff]  ;;  %p672_p0 = scmp.ne.s32.totalorder %s661_s8, %s671_s9  ;;  %p677_p2 = scmp.lt.s32.totalorder %s671_s9, %s671_s9 }
  0x1d   :  { %153 = vadd.xlane.f32.xlu1 %v152_v47  ;;  %v158_v9 = vsel %vm139_vm0, %v92_v5, 0.0  ;;  %v198_v17 = vsel %vm139_vm0, %v105_v12, 0.0  ;;  %v129_v19 = vmul.f32 %v77_v39, %v64_v15  ;;  %v118_v24 = vmul.f32 %v79_v1, %v53_v20  ;;  %v81_v27 = vld [vmem:[%s1225_s1 + $0x40] sm:$0xff]  ;;  %v42_v34 = vld [vmem:[%s1224_s0 + $0xa8] sm:$0xff]  ;;  %v55_v46 = vld [vmem:[%s1224_s0 + $0x110] sm:$0xff] }
  0x1e   :  { %262 = vadd.xlane.f32.xlu0 %v261_v48  ;;  %v267_v10 = vsel %vm139_vm0, %v128_v6, 0.0  ;;  %v161_v22 = vsel %vm139_vm0, %v93_v18, 0.0  ;;  %v106_v25 = vmul.f32 %v80_v14, %v41_v21  ;;  %v65_v28 = vld [vmem:[%s1224_s0 + $0x160] sm:$0xff]  ;;  %v94_v31 = vmul.f32 %v81_v27, %v29_v26  ;;  %v30_v39 = vld [vmem:[%s1224_s0 + $0x48] sm:$0xff]  ;;  %v43_v47 = vld [vmem:[%s1224_s0 + $0xb0] sm:$0xff]  ;;  %p678_p3 = por %p677_p2, %p676_p1 }
  0x1f   :  { %v270_v23 = vsel %vm139_vm0, %v129_v19, 0.0  ;;  %v237_v29 = vsel %vm139_vm0, %v118_v24, 0.0  ;;  %v130_v32 = vmul.f32 %v78_v52, %v65_v28  ;;  %v119_v37 = vmul.f32 %v80_v14, %v54_v33  ;;  %v82_v40 = vld [vmem:[%s1225_s1 + $0x48] sm:$0xff]  ;;  %v31_v52 = vld [vmem:[%s1224_s0 + $0x50] sm:$0xff]  ;;  %v56_v59 = vld [vmem:[%s1224_s0 + $0x118] sm:$0xff] }
  0x20   :  { %v201_v30 = vsel %vm139_vm0, %v106_v25, 0.0  ;;  %v164_v35 = vsel %vm139_vm0, %v94_v31, 0.0  ;;  %v107_v38 = vmul.f32 %v81_v27, %v42_v34  ;;  %v66_v41 = vld [vmem:[%s1224_s0 + $0x168] sm:$0xff]  ;;  %v95_v44 = vmul.f32 %v82_v40, %v30_v39  ;;  %v83_v53 = vld [vmem:[%s1225_s1 + $0x50] sm:$0xff]  ;;  %v84_v2 = vld [vmem:[%s1225_s1 + $0x58] sm:$0xff]  ;;  %p679_p4 = pnand %p678_p3, %p672_p0 }
  0x21   :  { %229 = vadd.xlane.f32.xlu1 %v228_v54  ;;  %v273_v36 = vsel %vm139_vm0, %v130_v32, 0.0  ;;  %v240_v42 = vsel %vm139_vm0, %v119_v37, 0.0  ;;  %v131_v45 = vmul.f32 %v79_v1, %v66_v41  ;;  %v120_v50 = vmul.f32 %v81_v27, %v55_v46  ;;  %v67_v54 = vld [vmem:[%s1224_s0 + $0x170] sm:$0xff]  ;;  %v32_v1 = vld [vmem:[%s1224_s0 + $0x58] sm:$0xff]  ;;  %v57_v8 = vld [vmem:[%s1224_s0 + $0x120] sm:$0xff] }
  0x22   :  { %193 = vadd.xlane.f32.xlu0 %v192_v55  ;;  %v204_v43 = vsel %vm139_vm0, %v107_v38, 0.0  ;;  %v167_v48 = vsel %vm139_vm0, %v95_v44, 0.0  ;;  %v108_v51 = vmul.f32 %v82_v40, %v43_v47  ;;  %v96_v57 = vmul.f32 %v83_v53, %v31_v52  ;;  %v85_v15 = vld [vmem:[%s1225_s1 + $0x60] sm:$0xf]  ;;  %v58_v21 = vld [vmem:[%s1224_s0 + $0x128] sm:$0xff]  ;;  %v71_v33 = vld [vmem:[%s1224_s0 + $0x190] sm:$0xff] }
  0x23   :  { %v276_v49 = vsel %vm139_vm0, %v131_v45, 0.0  ;;  %v243_v55 = vsel %vm139_vm0, %v120_v50, 0.0  ;;  %v132_v58 = vmul.f32 %v80_v14, %v67_v54  ;;  %v121_v63 = vmul.f32 %v82_v40, %v56_v59  ;;  %v33_v14 = vld [vmem:[%s1224_s0 + $0x60] sm:$0xf]  ;;  %v70_v28 = vld [vmem:[%s1224_s0 + $0x188] sm:$0xff] }
  0x24   :  { %v207_v56 = vsel %vm139_vm0, %v108_v51, 0.0  ;;  %v97_v6 = vmul.f32 %v84_v2, %v32_v1  ;;  %v122_v12 = vmul.f32 %v83_v53, %v57_v8  ;;  %v98_v19 = vmul.f32 %v85_v15, %v33_v14  ;;  %v72_v34 = vld [vmem:[%s1224_s0 + $0x198] sm:$0xf] }
  0x25   :  { %156 = vadd.xlane.f32.xlu1 %v155_v60  ;;  %v44_v60 = vld [vmem:[%s1224_s0 + $0xb8] sm:$0xff]  ;;  %v279_v62 = vsel %vm139_vm0, %v132_v58, 0.0  ;;  %v123_v25 = vmul.f32 %v84_v2, %v58_v21  ;;  %v135_v32 = vmul.f32 %v83_v53, %v70_v28  ;;  %v136_v37 = vmul.f32 %v84_v2, %v71_v33 }
  0x26   :  { %265 = vadd.xlane.f32.xlu0 %v264_v61  ;;  %v170_v61 = vsel %vm139_vm0, %v96_v57, 0.0  ;;  %v109_v0 = vmul.f32 %v83_v53, %v44_v60  ;;  %v137_v38 = vmul.f32 %v85_v15, %v72_v34  ;;  %v695_v41 = vmov 0.0  }
  0x27   :  { %v291_v39 = vsel %vm139_vm0, %v136_v37, 0.0  ;;  %20 = vst.msk [vmem:[#allocation2] sm:$0xf] %vm19_vm2, %v695_v41  ;;  %vm374_vm5 = vcmask 261312   ;;  %vm381_vm6 = vcmask 326912   ;;  %vm388_vm7 = vcmask 392512  }
  0x28   :  { %v210_v5 = vsel %vm139_vm0, %v109_v0, 0.0  ;;  %vm395_vm8 = vcmask 458112   ;;  %vm402_vm9 = vcmask 523712   ;;  %vm409_vm10 = vcmask 589312  }
  0x29   :  { %232 = vadd.xlane.f32.xlu1 %v231_v3  ;;  %v68_v3 = vld [vmem:[%s1224_s0 + $0x178] sm:$0xff]  ;;  %vm416_vm11 = vcmask 654912   ;;  %vm423_vm12 = vcmask 720512   ;;  %vm430_vm13 = vcmask 786112   ;;  %vm437_vm14 = vcmask 851712  }
  0x2a   :  { %196 = vadd.xlane.f32.xlu0 %v195_v4  ;;  %v246_v4 = vsel %vm139_vm0, %v121_v63, 0.0  ;;  %v133_v7 = vmul.f32 %v81_v27, %v68_v3  ;;  %v59_v27 = vld [vmem:[%s1224_s0 + $0x130] sm:$0xf]  ;;  %vm631_vm15 = vcmask 1041409  }
  0x2b   :  { %v124_v31 = vmul.f32 %v85_v15, %v59_v27 }
  0x2c   :  { %v282_v11 = vsel %vm139_vm0, %v133_v7, 0.0 }
  0x2d   :  { %159 = vadd.xlane.f32.xlu1 %v158_v9  ;;  %v45_v9 = vld [vmem:[%s1224_s0 + $0xc0] sm:$0xff] }
  0x2e   :  { %268 = vadd.xlane.f32.xlu0 %v267_v10  ;;  %v173_v10 = vsel %vm139_vm0, %v97_v6, 0.0  ;;  %v110_v13 = vmul.f32 %v84_v2, %v45_v9 }
  0x30   :  { %v213_v18 = vsel %vm139_vm0, %v110_v13, 0.0 }
  0x31   :  { %235 = vadd.xlane.f32.xlu1 %v234_v16  ;;  %v69_v16 = vld [vmem:[%s1224_s0 + $0x180] sm:$0xff] }
  0x32   :  { %199 = vadd.xlane.f32.xlu0 %v198_v17  ;;  %v249_v17 = vsel %vm139_vm0, %v122_v12, 0.0  ;;  %v134_v20 = vmul.f32 %v82_v40, %v69_v16  ;;  %v294_v40 = vsel %vm176_vm1, %v137_v38, 0.0 }
  0x34   :  { %v285_v24 = vsel %vm139_vm0, %v134_v20, 0.0 }
  0x35   :  { %162 = vadd.xlane.f32.xlu1 %v161_v22  ;;  %v46_v22 = vld [vmem:[%s1224_s0 + $0xc8] sm:$0xf] }
  0x36   :  { %271 = vadd.xlane.f32.xlu0 %v270_v23  ;;  %v177_v23 = vsel %vm176_vm1, %v98_v19, 0.0  ;;  %v111_v26 = vmul.f32 %v85_v15, %v46_v22 }
  0x39   :  { %238 = vadd.xlane.f32.xlu1 %v237_v29  ;;  %v252_v29 = vsel %vm139_vm0, %v123_v25, 0.0 }
  0x3a   :  { %202 = vadd.xlane.f32.xlu0 %v201_v30  ;;  %v216_v30 = vsel %vm176_vm1, %v111_v26, 0.0 }
  0x3d   :  { %165 = vadd.xlane.f32.xlu1 %v164_v35  ;;  %v255_v35 = vsel %vm176_vm1, %v124_v31, 0.0  ;;  %vm635_vm1 = vcmask 1043459  }
  0x3e   :  { %274 = vadd.xlane.f32.xlu0 %v273_v36  ;;  %v288_v36 = vsel %vm139_vm0, %v135_v32, 0.0  ;;  %vm633_vm0 = vcmask 1042434  }
  0x41   :  { %241 = vadd.xlane.f32.xlu1 %v240_v42  ;;  %v349_v42 = vlaneseq }
  0x42   :  { %205 = vadd.xlane.f32.xlu0 %v204_v43 }
  0x43   :  { %v965_v43 = vand.u32 127, %v349_v42  ;;  %v967_v44 = vshrl.u32 %v349_v42, 7 }
  0x45   :  { %168 = vadd.xlane.f32.xlu1 %v167_v48  ;;  %v355_v45 = vadd.s32 4294967288, %v965_v43  ;;  %v362_v48 = vadd.s32 4294967280, %v965_v43  ;;  %v369_v0 = vadd.s32 4294967272, %v965_v43  ;;  %v376_v13 = vadd.s32 4294967264, %v965_v43 }
  0x46   :  { %277 = vadd.xlane.f32.xlu0 %v276_v49  ;;  %v353_v49 = vsub.s32 %v965_v43, %v967_v44 }
  0x47   :  { %v358_v50 = vsub.s32 %v355_v45, %v967_v44  ;;  %v975_v53 = vsub.s32 %v362_v48, %v967_v44  ;;  %v985_v7 = vsub.s32 %v369_v0, %v967_v44  ;;  %v997_v19 = vsub.s32 %v376_v13, %v967_v44 }
  0x49   :  { %244 = vadd.xlane.f32.xlu1 %v243_v55 }
  0x4a   :  { %208 = vadd.xlane.f32.xlu0 %v207_v56 }
  0x4d   :  { %171 = vadd.xlane.f32.xlu1 %v170_v61 }
  0x4e   :  { %280 = vadd.xlane.f32.xlu0 %v279_v62 }
  0x51   :  { %247 = vadd.xlane.f32.xlu1 %v246_v4 }
  0x52   :  { %211 = vadd.xlane.f32.xlu0 %v210_v5 }
  0x55   :  { %174 = vadd.xlane.f32.xlu1 %v173_v10 }
  0x56   :  { %283 = vadd.xlane.f32.xlu0 %v282_v11 }
  0x59   :  { %250 = vadd.xlane.f32.xlu1 %v249_v17 }
  0x5a   :  { %214 = vadd.xlane.f32.xlu0 %v213_v18 }
  0x5d   :  { %178 = vadd.xlane.f32.xlu1 %v177_v23 }
  0x5e   :  { %286 = vadd.xlane.f32.xlu0 %v285_v24 }
  0x61   :  { %253 = vadd.xlane.f32.xlu1 %v252_v29 }
  0x62   :  { %217 = vadd.xlane.f32.xlu0 %v216_v30 }
  0x65   :  { %256 = vadd.xlane.f32.xlu1 %v255_v35 }
  0x66   :  { %289 = vadd.xlane.f32.xlu0 %v288_v36 }
  0x69   :  { %295 = vadd.xlane.f32.xlu1 %v294_v40 }
  0x6a   :  { %292 = vadd.xlane.f32.xlu0 %v291_v39 }
  0x92   :  { %v182_v46 = vpop.xlane.xlu1 %181 }
  0x93   :  { %v142_v47 = vpop.xlane.xlu0 %141  ;;  %v442_v54 = vrot.slane %v182_v46, %v353_v49 }
  0x94   :  { %v354_v55 = vrot.slane %v142_v47, %v353_v49 }
  0x96   :  { %v185_v51 = vpop.xlane.xlu1 %184 }
  0x97   :  { %v145_v52 = vpop.xlane.xlu0 %144  ;;  %v446_v56 = vrot.slane %v185_v51, %v358_v50 }
  0x98   :  { %v359_v57 = vrot.slane %v145_v52, %v358_v50  ;;  %v383_v52 = vadd.s32 4294967256, %v965_v43 }
  0x99   :  { %v447_v58 = vsel %vm360_vm3, %v446_v56, %v442_v54  ;;  %v390_v56 = vadd.s32 4294967248, %v965_v43 }
  0x9a   :  { %v361_v59 = vsel %vm360_vm3, %v359_v57, %v354_v55  ;;  %v188_v60 = vpop.xlane.xlu1 %187  ;;  %v397_v57 = vadd.s32 4294967240, %v965_v43 }
  0x9b   :  { %v148_v61 = vpop.xlane.xlu0 %147  ;;  %v451_v62 = vrot.slane %v188_v60, %v975_v53  ;;  %v411_v60 = vadd.s32 4294967224, %v965_v43  ;;  %v1071_v0 = vsub.s32 %v390_v56, %v967_v44 }
  0x9c   :  { %v366_v63 = vrot.slane %v148_v61, %v975_v53 }
  0x9d   :  { %v452_v1 = vsel %vm367_vm4, %v451_v62, %v447_v58  ;;  %v404_v58 = vadd.s32 4294967232, %v965_v43 }
  0x9e   :  { %v368_v2 = vsel %vm367_vm4, %v366_v63, %v361_v59  ;;  %v224_v3 = vpop.xlane.xlu1 %223  ;;  %v1062_v59 = vsub.s32 %v383_v52, %v967_v44  ;;  %v418_v63 = vadd.s32 4294967216, %v965_v43 }
  0x9f   :  { %v221_v4 = vpop.xlane.xlu0 %220  ;;  %v510_v5 = vrot.slane %v224_v3, %v358_v50  ;;  %v1078_v3 = vsub.s32 %v404_v58, %v967_v44 }
  0xa0   :  { %v506_v6 = vrot.slane %v221_v4, %v353_v49  ;;  %v432_v4 = vadd.s32 4294967200, %v965_v43  ;;  %v1099_v13 = vsub.s32 %v418_v63, %v967_v44 }
  0xa2   :  { %v511_v8 = vsel %vm360_vm3, %v510_v5, %v506_v6  ;;  %v191_v9 = vpop.xlane.xlu1 %190 }
  0xa3   :  { %v151_v10 = vpop.xlane.xlu0 %150  ;;  %v456_v11 = vrot.slane %v191_v9, %v985_v7  ;;  %v1088_v9 = vsub.s32 %v411_v60, %v967_v44 }
  0xa4   :  { %v373_v12 = vrot.slane %v151_v10, %v985_v7 }
  0xa5   :  { %v992_v14 = vsel %vm374_vm5, %v456_v11, %v452_v1  ;;  %v425_v1 = vadd.s32 4294967208, %v965_v43 }
  0xa6   :  { %v375_v15 = vsel %vm374_vm5, %v373_v12, %v368_v2  ;;  %v260_v16 = vpop.xlane.xlu1 %259  ;;  %v1075_v2 = vsub.s32 %v397_v57, %v967_v44 }
  0xa7   :  { %v227_v17 = vpop.xlane.xlu0 %226  ;;  %v570_v23 = vrot.slane %v260_v16, %v353_v49 }
  0xa8   :  { %v515_v18 = vrot.slane %v227_v17, %v975_v53 }
  0xaa   :  { %v1000_v20 = vsel %vm367_vm4, %v515_v18, %v511_v8  ;;  %v154_v21 = vpop.xlane.xlu1 %153  ;;  %v1108_v18 = vsub.s32 %v425_v1, %v967_v44 }
  0xab   :  { %v263_v22 = vpop.xlane.xlu0 %262  ;;  %v380_v24 = vrot.slane %v154_v21, %v997_v19 }
  0xac   :  { %v574_v25 = vrot.slane %v263_v22, %v358_v50  ;;  %v1115_v22 = vsub.s32 %v432_v4, %v967_v44 }
  0xad   :  { %v1004_v26 = vsel %vm381_vm6, %v380_v24, %v375_v15 }
  0xae   :  { %v1007_v27 = vsel %vm360_vm3, %v574_v25, %v570_v23  ;;  %v1009_v28 = vpop.xlane.xlu1 %229 }
  0xaf   :  { %v1011_v29 = vpop.xlane.xlu0 %193  ;;  %v520_v5 = vrot.slane %v1009_v28, %v985_v7 }
  0xb0   :  { %v461_v6 = vrot.slane %v1011_v29, %v997_v19 }
  0xb1   :  { %v521_v23 = vsel %vm374_vm5, %v520_v5, %v1000_v20 }
  0xb2   :  { %v1013_v30 = vpop.xlane.xlu1 %156 }
  0xb3   :  { %v1015_v31 = vpop.xlane.xlu0 %265  ;;  %v387_v8 = vrot.slane %v1013_v30, %v1062_v59 }
  0xb4   :  { %v579_v43 = vrot.slane %v1015_v31, %v975_v53 }
  0xb5   :  { %v389_v24 = vsel %vm388_vm7, %v387_v8, %v1004_v26 }
  0xb6   :  { %v1017_v32 = vpop.xlane.xlu1 %232  ;;  %v580_v29 = vsel %vm367_vm4, %v579_v43, %v1007_v27 }
  0xb7   :  { %v1019_v33 = vpop.xlane.xlu0 %196  ;;  %v525_v12 = vrot.slane %v1017_v32, %v997_v19 }
  0xb8   :  { %v466_v15 = vrot.slane %v1019_v33, %v1062_v59 }
  0xb9   :  { %v526_v30 = vsel %vm381_vm6, %v525_v12, %v521_v23 }
  0xba   :  { %v1021_v34 = vpop.xlane.xlu1 %159 }
  0xbb   :  { %v1023_v35 = vpop.xlane.xlu0 %268  ;;  %v394_v16 = vrot.slane %v1021_v34, %v1071_v0 }
  0xbc   :  { %v584_v17 = vrot.slane %v1023_v35, %v985_v7  ;;  %v462_v7 = vsel %vm381_vm6, %v461_v6, %v992_v14 }
  0xbd   :  { %v467_v14 = vsel %vm388_vm7, %v466_v15, %v462_v7  ;;  %v396_v31 = vsel %vm395_vm8, %v394_v16, %v389_v24 }
  0xbe   :  { %v1025_v36 = vpop.xlane.xlu1 %235  ;;  %v585_v26 = vsel %vm374_vm5, %v584_v17, %v580_v29 }
  0xbf   :  { %v1027_v37 = vpop.xlane.xlu0 %199  ;;  %v530_v53 = vrot.slane %v1025_v36, %v1062_v59 }
  0xc0   :  { %v471_v21 = vrot.slane %v1027_v37, %v1071_v0 }
  0xc1   :  { %v531_v27 = vsel %vm388_vm7, %v530_v53, %v526_v30 }
  0xc2   :  { %v1029_v38 = vpop.xlane.xlu1 %162  ;;  %v472_v33 = vsel %vm395_vm8, %v471_v21, %v467_v14 }
  0xc3   :  { %v1031_v39 = vpop.xlane.xlu0 %271  ;;  %v401_v44 = vrot.slane %v1029_v38, %v1075_v2 }
  0xc4   :  { %v589_v36 = vrot.slane %v1031_v39, %v997_v19 }
  0xc5   :  { %v403_v56 = vsel %vm402_vm9, %v401_v44, %v396_v31 }
  0xc6   :  { %v1033_v40 = vpop.xlane.xlu1 %238  ;;  %v590_v21 = vsel %vm381_vm6, %v589_v36, %v585_v26 }
  0xc7   :  { %v1035_v41 = vpop.xlane.xlu0 %202  ;;  %v535_v20 = vrot.slane %v1033_v40, %v1071_v0 }
  0xc8   :  { %v476_v32 = vrot.slane %v1035_v41, %v1075_v2 }
  0xca   :  { %v1037_v42 = vpop.xlane.xlu1 %165  ;;  %v477_v39 = vsel %vm402_vm9, %v476_v32, %v472_v33 }
  0xcb   :  { %v1039_v45 = vpop.xlane.xlu0 %274  ;;  %v408_v34 = vrot.slane %v1037_v42, %v1078_v3  ;;  %v536_v42 = vsel %vm395_vm8, %v535_v20, %v531_v27 }
  0xcd   :  { %v410_v57 = vsel %vm409_vm10, %v408_v34, %v403_v56  ;;  %v138_v34 = vld [vmem:[#allocation2] sm:$0xf] }
  0xce   :  { %v1041_v46 = vpop.xlane.xlu1 %241 }
  0xcf   :  { %v1043_v47 = vpop.xlane.xlu0 %205  ;;  %v540_v37 = vrot.slane %v1041_v46, %v1075_v2  ;;  %v594_v46 = vrot.slane %v1039_v45, %v1062_v59 }
  0xd0   :  { %v481_v35 = vrot.slane %v1043_v47, %v1078_v3 }
  0xd2   :  { %v1045_v48 = vpop.xlane.xlu1 %168  ;;  %v482_v58 = vsel %vm409_vm10, %v481_v35, %v477_v39 }
  0xd3   :  { %v1047_v49 = vpop.xlane.xlu0 %277  ;;  %v415_v38 = vrot.slane %v1045_v48, %v1088_v9 }
  0xd5   :  { %v417_v63 = vsel %vm416_vm11, %v415_v38, %v410_v57  ;;  %v668_v38 = vld [vmem:[%s1226_s2] ss:$0 sm:$0xff] }
  0xd6   :  { %v1049_v50 = vpop.xlane.xlu1 %244 }
  0xd7   :  { %v1051_v51 = vpop.xlane.xlu0 %208 }
  0xd8   :  { %v486_v40 = vrot.slane %v1051_v51, %v1088_v9 }
  0xda   :  { %v1054_v54 = vpop.xlane.xlu1 %171  ;;  %v487_v45 = vsel %vm416_vm11, %v486_v40, %v482_v58 }
  0xdb   :  { %v1056_v55 = vpop.xlane.xlu0 %280  ;;  %v422_v47 = vrot.slane %v1054_v54, %v1099_v13  ;;  %v545_v54 = vrot.slane %v1049_v50, %v1078_v3 }
  0xdc   :  { %v604_v16 = vrot.slane %v1056_v55, %v1075_v2 }
  0xdd   :  { %v424_v5 = vsel %vm423_vm12, %v422_v47, %v417_v63 }
  0xde   :  { %v1065_v61 = vpop.xlane.xlu1 %247 }
  0xdf   :  { %v1067_v62 = vpop.xlane.xlu0 %211  ;;  %v550_v59 = vrot.slane %v1065_v61, %v1088_v9 }
  0xe0   :  { %v491_v19 = vrot.slane %v1067_v62, %v1099_v13  ;;  %v541_v62 = vsel %vm402_vm9, %v540_v37, %v536_v42 }
  0xe1   :  { %v546_v61 = vsel %vm409_vm10, %v545_v54, %v541_v62 }
  0xe2   :  { %v1090_v10 = vpop.xlane.xlu1 %174  ;;  %v492_v6 = vsel %vm423_vm12, %v491_v19, %v487_v45  ;;  %v551_v23 = vsel %vm416_vm11, %v550_v59, %v546_v61 }
  0xe3   :  { %v1092_v11 = vpop.xlane.xlu0 %283  ;;  %v429_v48 = vrot.slane %v1090_v10, %v1108_v18  ;;  %v599_v10 = vrot.slane %v1047_v49, %v1071_v0 }
  0xe4   :  { %v609_v49 = vrot.slane %v1092_v11, %v1078_v3 }
  0xe5   :  { %v431_v43 = vsel %vm430_vm13, %v429_v48, %v424_v5 }
  0xe6   :  { %v251_v25 = vpop.xlane.xlu1 %250 }
  0xe7   :  { %v215_v28 = vpop.xlane.xlu0 %214  ;;  %v555_v8 = vrot.slane %v251_v25, %v1099_v13  ;;  %v595_v25 = vsel %vm388_vm7, %v594_v46, %v590_v21 }
  0xe8   :  { %v496_v51 = vrot.slane %v215_v28, %v1108_v18  ;;  %v600_v29 = vsel %vm395_vm8, %v599_v10, %v595_v25 }
  0xe9   :  { %v556_v28 = vsel %vm423_vm12, %v555_v8, %v551_v23  ;;  %v605_v3 = vsel %vm402_vm9, %v604_v16, %v600_v29 }
  0xea   :  { %v179_v41 = vpop.xlane.xlu1 %178  ;;  %v497_v12 = vsel %vm430_vm13, %v496_v51, %v492_v6  ;;  %v610_v20 = vsel %vm409_vm10, %v609_v49, %v605_v3 }
  0xeb   :  { %v287_v52 = vpop.xlane.xlu0 %286  ;;  %v436_v60 = vrot.slane %v179_v41, %v1115_v22 }
  0xec   :  { %v614_v55 = vrot.slane %v287_v52, %v1088_v9 }
  0xed   :  { %v438_v17 = vsel %vm437_vm14, %v436_v60, %v431_v43 }
  0xee   :  { %v254_v1 = vpop.xlane.xlu1 %253  ;;  %v615_v9 = vsel %vm416_vm11, %v614_v55, %v610_v20 }
  0xef   :  { %v218_v4 = vpop.xlane.xlu0 %217  ;;  %v560_v15 = vrot.slane %v254_v1, %v1108_v18 }
  0xf0   :  { %v501_v50 = vrot.slane %v218_v4, %v1115_v22 }
  0xf1   :  { %v561_v30 = vsel %vm430_vm13, %v560_v15, %v556_v28 }
  0xf2   :  { %v502_v53 = vsel %vm437_vm14, %v501_v50, %v497_v12  ;;  %v257_v7 = vpop.xlane.xlu1 %256 }
  0xf3   :  { %v632_v0 = vsel %vm631_vm15, %v502_v53, %v438_v17  ;;  %v290_v24 = vpop.xlane.xlu0 %289  ;;  %v565_v2 = vrot.slane %v257_v7, %v1115_v22 }
  0xf4   :  { %v619_v44 = vrot.slane %v290_v24, %v1099_v13 }
  0xf5   :  { %v566_v11 = vsel %vm437_vm14, %v565_v2, %v561_v30 }
  0xf6   :  { %v634_v14 = vsel %vm633_vm0, %v566_v11, %v632_v0  ;;  %v296_v26 = vpop.xlane.xlu1 %295  ;;  %v620_v33 = vsel %vm423_vm12, %v619_v44, %v615_v9 }
  0xf7   :  { %v293_v31 = vpop.xlane.xlu0 %292  ;;  %v629_v27 = vrot.slane %v296_v26, %v1115_v22 }
  0xf8   :  { %v624_v32 = vrot.slane %v293_v31, %v1108_v18 }
  0xfa   :  { %v625_v13 = vsel %vm430_vm13, %v624_v32, %v620_v33 }
  0xfb   :  { %v630_v35 = vsel %vm437_vm14, %v629_v27, %v625_v13 }
  0xfc   :  { %v636_v36 = vsel %vm635_vm1, %v630_v35, %v634_v14 }
  0xfd   :  { %v638_v37 = vadd.f32 %v636_v36, %v138_v34 }
  0xff   :  { %640 = vst.msk [vmem:[#allocation2] sm:$0xf] %vm19_vm2, %v638_v37 }
 0x106   :  { %v644_v18 = vld [vmem:[#allocation2] sm:$0xf] }
 0x107   :  { %v652_v22 = vadd.f32 %v668_v38, %v644_v18 }
 0x109   :  { %653 = vst.msk [vmem:[#allocation3] sm:$0xf] %vm19_vm2, %v652_v22 }
 0x10a   :  { %682 = shalt.err (!%p679_p4)
}
 0x10b   :  { %s683_s12 = scalar_lea.hbm %s1227_s3, 64 }
 0x10c   :  { %p684_p5 = scmp.ne.s32.totalorder %s1227_s3, %s683_s12  ;;  %p687_p6 = scmp.lt.u32.totalorder %s683_s12, %s1227_s3 }
 0x10e   :  { %p689_p7 = pnand %p687_p6, %p684_p5 }
 0x110   :  { %692 = shalt.err (!%p689_p7)
}
 0x111   :  { %663 = dma.vmem_to_hbm [thread:$0]  %s661_s8, 64, %s1227_s3, [#allocation4]  }
 0x112   :  { %693 = dma.done.wait [#allocation4], 64  }
 0x113   :  { %694 = vsyncadd [#allocation4], 4294967232 }
 0x114   :  { %667 = vsyncpa [#allocation4], 1 }

</bundles_post_ra>
